<compile_context>
chip_gen: v6e
topology: v6e:2x2x1
jax: 0.10.0
libtpu: 0.0.40
codegen_flags: <defaults>
</compile_context>

<pallas_src>
import numpy as np
import jax
import jax.numpy as jnp
from jax.experimental import pallas as pl
from jax.experimental.pallas import tpu as pltpu

VMEM = pl.BlockSpec(memory_space=pltpu.MemorySpace.VMEM)
EPS = 1e-5

# ----------------------- model configuration (small) -----------------------
INPUT_DIM = 32
CNN_INPUT_DIM = (4, 4, 4)          # (C0, H0, W0); nn.Unflatten(1, cnn_input_dim)
LAYERS = (
    dict(cin=4, cout=8, k=3, stride=2, padding=1, output_padding=1, bn=True,  act="relu"),
    dict(cin=8, cout=3, k=3, stride=2, padding=1, output_padding=1, bn=False, act="sigmoid"),
)
OUTPUT_DIM = (3, 16, 16)


def _round8(n):
    return -(-n // 8) * 8


def _pk_layout():
    """Layout of the single packed per-channel-parameter column operand.
    Each (C,) block is padded to a multiple of 8 rows so every in-kernel slice is
    sublane-aligned."""
    C0 = CNN_INPUT_DIM[0]
    blocks = [("fc_g", C0), ("fc_b", C0)]
    for i, layer in enumerate(LAYERS):
        if layer["bn"]:
            blocks += [(f"bn{i}_g", layer["cout"]), (f"bn{i}_b", layer["cout"])]
    offs, off = {}, 0
    for name, size in blocks:
        offs[name] = (off, size)
        off += _round8(size)
    return offs, off


PK_SLOTS, PK_ROWS = _pk_layout()


# --------------------------- in-kernel helpers ------------------------------
def _bn_relu(a, gamma, beta, *, B, C):
    """Training-mode BatchNorm2d + ReLU on a (B*C, HW) slab (rows ordered (b, c)).

    One-pass statistics: mean = E[x], var = E[x^2] - mean^2 -> the two lane reductions
    are independent (no serialized reduce -> center -> reduce chain)."""
    inv_n = 1.0 / float(B * a.shape[1])
    row_s = jnp.sum(a, axis=1, keepdims=True)          # (B*C, 1)
    row_q = jnp.sum(a * a, axis=1, keepdims=True)      # (B*C, 1)
    ch_s, ch_q = row_s[0:C], row_q[0:C]
    for b in range(1, B):                               # fold batch (B contiguous slices)
        ch_s = ch_s + row_s[b * C:(b + 1) * C]
        ch_q = ch_q + row_q[b * C:(b + 1) * C]
    mean = ch_s * inv_n
    var = ch_q * inv_n - mean * mean                    # biased variance (PyTorch BN)
    scale = gamma * jax.lax.rsqrt(var + EPS)            # rsqrt -> EUP slot
    shift = beta - mean * scale
    if B > 1:                                            # broadcast (C,1) -> (B*C,1)
        scale = jnp.concatenate([scale] * B, axis=0)
        shift = jnp.concatenate([shift] * B, axis=0)
    return jnp.maximum(a * scale + shift, 0.0)


def _conv_transpose_s2(a, wcm_ref, sc_ref, *, B, Cout, H, W):
    """Phase-split stride-2 ConvTranspose2d (k=3, p=1, op=1) as two fused MXU matmuls.

    a:       (B*Cin, H*W) slab, rows (b, cin), lanes (h, w) of a single image.
    wcm_ref: (4*Rp, 4*B*Cin + 1) fused channel-mix weight for all 4 output phases
             (block-diagonal over batch, conv bias folded into the last column).
    sc_ref:  (4*H*W, 4*H*W) bf16 0/1 permutation matrix (batch independent) that
             interleaves phase p pixel (m, n) to output pixel (2m+dy, 2n+dx).
    Returns (B*Cout, Ho*Wo) with rows (b, cout)."""
    assert W & (W - 1) == 0, "image width must be a power of two for bit-op masks"
    HW = H * W
    R = a.shape[0]

    # Shifted taps x[m, n+1], x[m+1, n], x[m+1, n+1]; out-of-image taps are zero.
    # Static in-vreg lane slices + zero pads; only the right-edge mask is needed
    # (bottom edge is handled by the zero pad), and it uses bit ops, not mod.
    col = jax.lax.broadcasted_iota(jnp.int32, (1, HW), 1)
    n_ok = (col & (W - 1)) != (W - 1)                       # not the last pixel of a row
    s01 = jnp.where(n_ok, jnp.concatenate([a[:, 1:], jnp.zeros((R, 1), jnp.float32)], axis=1), 0.0)
    s10 = jnp.concatenate([a[:, W:], jnp.zeros((R, W), jnp.float32)], axis=1)
    s11 = jnp.where(n_ok, jnp.concatenate([a[:, W + 1:], jnp.zeros((R, W + 1), jnp.float32)],
                                          axis=1), 0.0)
    ones_row = jnp.ones((1, HW), jnp.float32)               # carries the conv bias
    stack = jnp.concatenate([a, s01, s10, s11, ones_row], axis=0)   # (4*B*Cin + 1, HW)

    # (1) ONE channel-mix matmul for all 4 phases (+ bias).  rows of pm: (phase, b, cout).
    pm = jnp.dot(wcm_ref[...], stack, preferred_element_type=jnp.float32)   # (4*Rp, HW)

    # (2) lane-concat the 4 phase blocks and apply ONE 0/1 permutation matmul that
    #     interleaves them into (oy, ox) = (2m+dy, 2n+dx) pixel order.
    Rb = B * Cout
    Rp = wcm_ref.shape[0] // 4
    phases = jnp.concatenate([pm[p * Rp:p * Rp + Rb, :] for p in range(4)], axis=1)  # (Rb, 4HW)
    return jnp.dot(phases, sc_ref[...].astype(jnp.float32),
                   preferred_element_type=jnp.float32)                       # (Rb, Ho*Wo)


# ------------------------------ fused kernel --------------------------------
def _decoder_kernel(x_ref, fcw_ref, pk_ref, wcm0_ref, sc0_ref, wcm1_ref, sc1_ref, o_ref):
    B = x_ref.shape[0]
    C0, H0, W0 = CNN_INPUT_DIM
    HW0 = H0 * W0
    pk = pk_ref[...]

    # ---- fc: Linear, bias folded in via an augmented ones column (one MXU matmul) ----
    xa = jnp.concatenate([x_ref[...], jnp.ones((B, 1), jnp.float32)], axis=1)   # (B, in+1)
    mt = jnp.dot(xa, fcw_ref[...], preferred_element_type=jnp.float32)          # (B, C0*HW0)

    # ---- Unflatten -> (B*C0, H0*W0) slab: rows (b, c), lanes (h, w) ----
    # TODO(synk): O(B*C0) static lane slices (8 at B=2); swap for a single relayout
    # (pltpu.einshape) if batch ever grows.
    a = jnp.concatenate(
        [mt[b:b + 1, c * HW0:(c + 1) * HW0] for b in range(B) for c in range(C0)], axis=0)

    # ---- fc: BatchNorm2d (training mode) + ReLU ----
    gfc = pk[PK_SLOTS["fc_g"][0]:PK_SLOTS["fc_g"][0] + C0]
    bfc = pk[PK_SLOTS["fc_b"][0]:PK_SLOTS["fc_b"][0] + C0]
    a = _bn_relu(a, gfc, bfc, B=B, C=C0)

    # ---- ConvTranspose2d stack ----
    layer_refs = ((wcm0_ref, sc0_ref), (wcm1_ref, sc1_ref))
    H, W = H0, W0
    for i, layer in enumerate(LAYERS):
        wcm_ref, sc_ref = layer_refs[i]
        a = _conv_transpose_s2(a, wcm_ref, sc_ref, B=B, Cout=layer["cout"], H=H, W=W)
        if layer["bn"]:                                   # BN + ReLU (layer act is relu)
            g = pk[PK_SLOTS[f"bn{i}_g"][0]:PK_SLOTS[f"bn{i}_g"][0] + layer["cout"]]
            bt = pk[PK_SLOTS[f"bn{i}_b"][0]:PK_SLOTS[f"bn{i}_b"][0] + layer["cout"]]
            a = _bn_relu(a, g, bt, B=B, C=layer["cout"])
        elif layer["act"] == "relu":
            a = jnp.maximum(a, 0.0)
        if layer["act"] == "sigmoid":
            a = jax.nn.sigmoid(a)
        H, W = H * layer["stride"], W * layer["stride"]

    # (B*Cout, Hf*Wf) already in NCHW-flattened order; 256 lanes -> unmasked stores.
    o_ref[...] = a


# -------------------- host-side parameter preparation ------------------------
def _phase_weights(w_t, stride, padding):
    """Pack PyTorch ConvTranspose2d weights (Cin, Cout, K, K) into per-output-phase
    matrices (stride*stride, Cout, 4*Cin) acting on the stacked 2x2 input neighborhood
    [x(m,n); x(m,n+1); x(m+1,n); x(m+1,n+1)]."""
    Cin, Cout, K, _ = w_t.shape
    wp = np.zeros((stride * stride, Cout, 4 * Cin), np.float32)
    placed = 0
    for kh in range(K):
        for kw in range(K):
            for dly in range(2):
                ph_y = stride * dly - padding + kh
                if not (0 <= ph_y < stride):
                    continue
                for dlx in range(2):
                    ph_x = stride * dlx - padding + kw
                    if not (0 <= ph_x < stride):
                        continue
                    p = ph_y * stride + ph_x
                    s_idx = dly * 2 + dlx
                    wp[p, :, s_idx * Cin:(s_idx + 1) * Cin] += w_t[:, :, kh, kw].T
                    placed += 1
    assert placed == K * K, "phase-split prep assumes k=3, stride=2, padding=1 taps"
    return wp


def _fused_channel_mix(w_t, bias, stride, padding, B):
    """ONE matrix for all 4 phases' channel mixing, block-diagonal over batch, with the
    conv bias in an augmented last column.  Shape (4*Rp, 4*B*Cin + 1); per-phase row
    blocks are padded to a multiple of 8 rows so in-kernel slices are sublane-aligned."""
    Cin, Cout, K, _ = w_t.shape
    wp = _phase_weights(w_t, stride, padding)                    # (4, Cout, 4*Cin)
    P = stride * stride
    Rp = _round8(B * Cout)
    out = np.zeros((P * Rp, 4 * B * Cin + 1), np.float32)
    for p in range(P):
        for b in range(B):
            r0 = p * Rp + b * Cout
            for s in range(4):
                c0 = s * B * Cin + b * Cin
                out[r0:r0 + Cout, c0:c0 + Cin] = wp[p, :, s * Cin:(s + 1) * Cin]
            out[r0:r0 + Cout, -1] = bias
    return out


def _fused_scatter(H, W, stride, Ho, Wo):
    """Batch-independent 0/1 permutation: phase p pixel (m, n) -> output pixel
    (stride*m + dy, stride*n + dx).  Shape (stride*stride*H*W, Ho*Wo)."""
    HW = H * W
    sc = np.zeros((stride * stride * HW, Ho * Wo), np.float32)
    for p in range(stride * stride):
        dy, dx = p // stride, p % stride
        for m in range(H):
            for n in range(W):
                sc[p * HW + m * W + n, (stride * m + dy) * Wo + (stride * n + dx)] = 1.0
    return sc


def _pad_col8(v):
    v = np.asarray(v, np.float32).reshape(-1, 1)
    return np.pad(v, ((0, (-v.shape[0]) % 8), (0, 0)))


def prepare_params(params, batch):
    """Host-side (numpy, outside jit) re-layout of PyTorch-layout parameters into the
    kernel operand layouts.  All constants are batch-independent in the lane-mixing
    direction; only the tiny channel-mix weights grow (linearly) with batch."""
    B = batch
    C0, H0, W0 = CNN_INPUT_DIM

    fcw = np.asarray(params["fc_w"], np.float32)                       # (C0*H0*W0, in)
    fcb = np.asarray(params["fc_b"], np.float32)
    fcw_aug = np.concatenate([fcw.T, fcb[None, :]], axis=0)            # (in+1, C0*H0*W0)

    pk = np.concatenate([_pad_col8(params["fc_bn_g"]), _pad_col8(params["fc_bn_b"]),
                         _pad_col8(params["bn0_g"]), _pad_col8(params["bn0_b"])], axis=0)
    assert pk.shape[0] == PK_ROWS

    p = {"fcw": jnp.asarray(fcw_aug), "pk": jnp.asarray(pk)}
    H, W = H0, W0
    for i, layer in enumerate(LAYERS):
        k, s = layer["k"], layer["stride"]
        pad, op = layer["padding"], layer["output_padding"]
        Ho = (H - 1) * s - 2 * pad + k + op
        Wo = (W - 1) * s - 2 * pad + k + op
        assert Ho == s * H and Wo == s * W, "phase-split prep assumes Ho == stride*H"
        w_t = np.asarray(params[f"ct{i}_w"], np.float32)
        bias = np.asarray(params[f"ct{i}_b"], np.float32)
        p[f"wcm{i}"] = jnp.asarray(_fused_channel_mix(w_t, bias, s, pad, B))
        # 0/1 values are exact in bf16 -> half the constant DMA bytes; upcast in-kernel.
        p[f"sc{i}"] = jnp.asarray(_fused_scatter(H, W, s, Ho, Wo), dtype=jnp.bfloat16)
        H, W = Ho, Wo
    return p


# ------------------------------ decoder forward ------------------------------
def decoder_forward(prepped, x):
    """x: (B, input_dim) -> (B, C_out, H_out, W_out)  (NCHW, like PyTorch)."""
    B = x.shape[0]
    C2, Hf, Wf = OUTPUT_DIM
    out_flat = pl.pallas_call(
        _decoder_kernel,
        out_shape=jax.ShapeDtypeStruct((B * C2, Hf * Wf), jnp.float32),
        in_specs=[VMEM] * 7,
        out_specs=VMEM,
    )(x, prepped["fcw"], prepped["pk"],
      prepped["wcm0"], prepped["sc0"], prepped["wcm1"], prepped["sc1"])
    return out_flat.reshape(B, C2, Hf, Wf)      # free contiguous reshape (NCHW)


# ----------------------- deterministic parameter init -----------------------
def init_params(key):
    C0, H0, W0 = CNN_INPUT_DIM
    P = C0 * H0 * W0
    keys = iter(jax.random.split(key, 32))
    p = {}
    p["fc_w"] = 0.2 * jax.random.normal(next(keys), (P, INPUT_DIM), jnp.float32)
    p["fc_b"] = 0.1 * jax.random.normal(next(keys), (P,), jnp.float32)
    p["fc_bn_g"] = 1.0 + 0.1 * jax.random.normal(next(keys), (C0,), jnp.float32)
    p["fc_bn_b"] = 0.1 * jax.random.normal(next(keys), (C0,), jnp.float32)
    for i, layer in enumerate(LAYERS):
        p[f"ct{i}_w"] = 0.2 * jax.random.normal(
            next(keys), (layer["cin"], layer["cout"], layer["k"], layer["k"]), jnp.float32)
        p[f"ct{i}_b"] = 0.1 * jax.random.normal(next(keys), (layer["cout"],), jnp.float32)
        if layer["bn"]:
            p[f"bn{i}_g"] = 1.0 + 0.1 * jax.random.normal(next(keys), (layer["cout"],), jnp.float32)
            p[f"bn{i}_b"] = 0.1 * jax.random.normal(next(keys), (layer["cout"],), jnp.float32)
    return p


# ------------------------- pure-numpy reference check -------------------------
def np_conv_transpose2d(x, w, b, stride, padding, output_padding):
    # x: (B, Cin, H, W), w: (Cin, Cout, K, K) -- scatter formulation (independent check)
    B, Cin, H, W = x.shape
    _, Cout, K, _ = w.shape
    Ho = (H - 1) * stride - 2 * padding + K + output_padding
    Wo = (W - 1) * stride - 2 * padding + K + output_padding
    full = np.zeros((B, Cout, (H - 1) * stride + K, (W - 1) * stride + K), np.float32)
    for kh in range(K):
        for kw in range(K):
            contrib = np.einsum("bchw,cd->bdhw", x, w[:, :, kh, kw])
            full[:, :, kh:kh + (H - 1) * stride + 1:stride,
                 kw:kw + (W - 1) * stride + 1:stride] += contrib
    out = full[:, :, padding:padding + Ho, padding:padding + Wo]
    return out + b.reshape(1, Cout, 1, 1)


def np_bn(x, gamma, beta):
    mean = x.mean(axis=(0, 2, 3), keepdims=True)
    var = x.var(axis=(0, 2, 3), keepdims=True)
    xn = (x - mean) / np.sqrt(var + EPS)
    return xn * gamma.reshape(1, -1, 1, 1) + beta.reshape(1, -1, 1, 1)


def ref_forward(p, x):
    B = x.shape[0]
    C0, H0, W0 = CNN_INPUT_DIM
    y = x @ p["fc_w"].T + p["fc_b"]
    y = y.reshape(B, C0, H0, W0)
    y = np.maximum(np_bn(y, p["fc_bn_g"], p["fc_bn_b"]), 0.0)
    for i, layer in enumerate(LAYERS):
        y = np_conv_transpose2d(y, p[f"ct{i}_w"], p[f"ct{i}_b"],
                                layer["stride"], layer["padding"], layer["output_padding"])
        if layer["bn"]:
            y = np_bn(y, p[f"bn{i}_g"], p[f"bn{i}_b"])
        if layer["act"] == "relu":
            y = np.maximum(y, 0.0)
        elif layer["act"] == "sigmoid":
            y = 1.0 / (1.0 + np.exp(-y))
    return y


if __name__ == "__main__":
    key = jax.random.PRNGKey(0)
    pkey, xkey = jax.random.split(key)
    params = init_params(pkey)
    x = jax.random.normal(xkey, (2, INPUT_DIM), jnp.float32)

    prepped = prepare_params(params, batch=x.shape[0])
    out = jax.jit(decoder_forward)(prepped, x)
    out = jax.block_until_ready(out)
    assert out.shape == (2,) + OUTPUT_DIM, out.shape

    ref = ref_forward({k: np.asarray(v) for k, v in params.items()}, np.asarray(x))
    np.testing.assert_allclose(np.asarray(out), ref, rtol=1e-3, atol=1e-4)
    print("KERNEL_OK")
</pallas_src>

<mosaic_0001>
module attributes {stable_mosaic.version = 11 : i64} {
  func.func @_decoder_kernel(%arg0: memref<2x32xf32, #tpu.memory_space<vmem>>, %arg1: memref<33x64xf32, #tpu.memory_space<vmem>>, %arg2: memref<32x1xf32, #tpu.memory_space<vmem>>, %arg3: memref<64x33xf32, #tpu.memory_space<vmem>>, %arg4: memref<64x64xbf16, #tpu.memory_space<vmem>>, %arg5: memref<32x65xf32, #tpu.memory_space<vmem>>, %arg6: memref<256x256xbf16, #tpu.memory_space<vmem>>, %arg7: memref<6x256xf32, #tpu.memory_space<vmem>>) attributes {dimension_semantics = [], scalar_prefetch = 0 : i64, scratch_operands = 0 : i64, tpu.core_type = #tpu.core_type<tc>} {
    %c0 = arith.constant 0 : index
    %c0_0 = arith.constant 0 : index
    %0 = vector.load %arg2[%c0, %c0_0] : memref<32x1xf32, #tpu.memory_space<vmem>>, vector<32x1xf32>
    %c0_1 = arith.constant 0 : index
    %c0_2 = arith.constant 0 : index
    %1 = vector.load %arg0[%c0_1, %c0_2] : memref<2x32xf32, #tpu.memory_space<vmem>>, vector<2x32xf32>
    %cst = arith.constant 1.000000e+00 : f32
    %2 = vector.broadcast %cst : f32 to vector<2x1xf32>
    %3 = tpu.concatenate %1, %2 in 1 : vector<2x32xf32>, vector<2x1xf32> -> vector<2x33xf32>
    %c0_3 = arith.constant 0 : index
    %c0_4 = arith.constant 0 : index
    %4 = vector.load %arg1[%c0_3, %c0_4] : memref<33x64xf32, #tpu.memory_space<vmem>>, vector<33x64xf32>
    %cst_5 = arith.constant dense<0.000000e+00> : vector<2x64xf32>
    %5 = tpu.matmul %3, %4, %cst_5 {dimension_numbers = #tpu.dot_dimension_numbers<[1], [0], [0], [1], [0, 0, 1, 1], [], []>} : vector<2x33xf32>, vector<33x64xf32>, vector<2x64xf32> -> vector<2x64xf32>
    %6 = vector.extract_strided_slice %5 {offsets = [0, 0], sizes = [1, 16], strides = [1, 1]} : vector<2x64xf32> to vector<1x16xf32>
    %7 = vector.extract_strided_slice %5 {offsets = [0, 16], sizes = [1, 16], strides = [1, 1]} : vector<2x64xf32> to vector<1x16xf32>
    %8 = vector.extract_strided_slice %5 {offsets = [0, 32], sizes = [1, 16], strides = [1, 1]} : vector<2x64xf32> to vector<1x16xf32>
    %9 = vector.extract_strided_slice %5 {offsets = [0, 48], sizes = [1, 16], strides = [1, 1]} : vector<2x64xf32> to vector<1x16xf32>
    %10 = vector.extract_strided_slice %5 {offsets = [1, 0], sizes = [1, 16], strides = [1, 1]} : vector<2x64xf32> to vector<1x16xf32>
    %11 = vector.extract_strided_slice %5 {offsets = [1, 16], sizes = [1, 16], strides = [1, 1]} : vector<2x64xf32> to vector<1x16xf32>
    %12 = vector.extract_strided_slice %5 {offsets = [1, 32], sizes = [1, 16], strides = [1, 1]} : vector<2x64xf32> to vector<1x16xf32>
    %13 = vector.extract_strided_slice %5 {offsets = [1, 48], sizes = [1, 16], strides = [1, 1]} : vector<2x64xf32> to vector<1x16xf32>
    %14 = tpu.concatenate %6, %7, %8, %9, %10, %11, %12, %13 in 0 : vector<1x16xf32>, vector<1x16xf32>, vector<1x16xf32>, vector<1x16xf32>, vector<1x16xf32>, vector<1x16xf32>, vector<1x16xf32>, vector<1x16xf32> -> vector<8x16xf32>
    %15 = vector.extract_strided_slice %0 {offsets = [0, 0], sizes = [4, 1], strides = [1, 1]} : vector<32x1xf32> to vector<4x1xf32>
    %16 = vector.extract_strided_slice %0 {offsets = [8, 0], sizes = [4, 1], strides = [1, 1]} : vector<32x1xf32> to vector<4x1xf32>
    %cst_6 = arith.constant dense<0.000000e+00> : vector<8xf32>
    %17 = vector.multi_reduction <add>, %14, %cst_6 [1] : vector<8x16xf32> to vector<8xf32>
    %18 = vector.shape_cast %17 : vector<8xf32> to vector<8x1xf32>
    %19 = arith.mulf %14, %14 : vector<8x16xf32>
    %cst_7 = arith.constant dense<0.000000e+00> : vector<8xf32>
    %20 = vector.multi_reduction <add>, %19, %cst_7 [1] : vector<8x16xf32> to vector<8xf32>
    %21 = vector.shape_cast %20 : vector<8xf32> to vector<8x1xf32>
    %22 = vector.extract_strided_slice %18 {offsets = [0, 0], sizes = [4, 1], strides = [1, 1]} : vector<8x1xf32> to vector<4x1xf32>
    %23 = vector.extract_strided_slice %21 {offsets = [0, 0], sizes = [4, 1], strides = [1, 1]} : vector<8x1xf32> to vector<4x1xf32>
    %24 = vector.extract_strided_slice %18 {offsets = [4, 0], sizes = [4, 1], strides = [1, 1]} : vector<8x1xf32> to vector<4x1xf32>
    %25 = arith.addf %22, %24 : vector<4x1xf32>
    %26 = vector.extract_strided_slice %21 {offsets = [4, 0], sizes = [4, 1], strides = [1, 1]} : vector<8x1xf32> to vector<4x1xf32>
    %27 = arith.addf %23, %26 : vector<4x1xf32>
    %cst_8 = arith.constant 3.125000e-02 : f32
    %28 = vector.broadcast %cst_8 : f32 to vector<4x1xf32>
    %29 = arith.mulf %25, %28 : vector<4x1xf32>
    %cst_9 = arith.constant 3.125000e-02 : f32
    %30 = vector.broadcast %cst_9 : f32 to vector<4x1xf32>
    %31 = arith.mulf %27, %30 : vector<4x1xf32>
    %32 = arith.mulf %29, %29 : vector<4x1xf32>
    %33 = arith.subf %31, %32 : vector<4x1xf32>
    %cst_10 = arith.constant 9.99999974E-6 : f32
    %34 = vector.broadcast %cst_10 : f32 to vector<4x1xf32>
    %35 = arith.addf %33, %34 : vector<4x1xf32>
    %36 = math.rsqrt %35 : vector<4x1xf32>
    %37 = arith.mulf %15, %36 : vector<4x1xf32>
    %38 = arith.mulf %29, %37 : vector<4x1xf32>
    %39 = arith.subf %16, %38 : vector<4x1xf32>
    %40 = tpu.concatenate %37, %37 in 0 : vector<4x1xf32>, vector<4x1xf32> -> vector<8x1xf32>
    %41 = tpu.concatenate %39, %39 in 0 : vector<4x1xf32>, vector<4x1xf32> -> vector<8x1xf32>
    %42 = vector.broadcast %40 : vector<8x1xf32> to vector<8x16xf32>
    %43 = arith.mulf %14, %42 : vector<8x16xf32>
    %44 = vector.broadcast %41 : vector<8x1xf32> to vector<8x16xf32>
    %45 = arith.addf %43, %44 : vector<8x16xf32>
    %cst_11 = arith.constant 0.000000e+00 : f32
    %46 = vector.broadcast %cst_11 : f32 to vector<8x16xf32>
    %47 = arith.maximumf %45, %46 : vector<8x16xf32>
    %48 = tpu.iota {dimensions = array<i32: 1>} : vector<1x16xi32>
    %c3_i32 = arith.constant 3 : i32
    %49 = vector.broadcast %c3_i32 : i32 to vector<1x16xi32>
    %50 = arith.andi %48, %49 : vector<1x16xi32>
    %c3_i32_12 = arith.constant 3 : i32
    %51 = vector.broadcast %c3_i32_12 : i32 to vector<1x16xi32>
    %52 = arith.cmpi ne, %50, %51 : vector<1x16xi32>
    %53 = vector.extract_strided_slice %47 {offsets = [0, 1], sizes = [8, 15], strides = [1, 1]} : vector<8x16xf32> to vector<8x15xf32>
    %cst_13 = arith.constant 0.000000e+00 : f32
    %54 = vector.broadcast %cst_13 : f32 to vector<8x1xf32>
    %55 = tpu.concatenate %53, %54 in 1 : vector<8x15xf32>, vector<8x1xf32> -> vector<8x16xf32>
    %cst_14 = arith.constant 0.000000e+00 : f32
    %56 = vector.shape_cast %52 : vector<1x16xi1> to vector<1x16xi1>
    %57 = vector.broadcast %56 : vector<1x16xi1> to vector<8x16xi1>
    %58 = vector.broadcast %cst_14 : f32 to vector<8x16xf32>
    %59 = arith.select %57, %55, %58 : vector<8x16xi1>, vector<8x16xf32>
    %60 = vector.extract_strided_slice %47 {offsets = [0, 4], sizes = [8, 12], strides = [1, 1]} : vector<8x16xf32> to vector<8x12xf32>
    %cst_15 = arith.constant 0.000000e+00 : f32
    %61 = vector.broadcast %cst_15 : f32 to vector<8x4xf32>
    %62 = tpu.concatenate %60, %61 in 1 : vector<8x12xf32>, vector<8x4xf32> -> vector<8x16xf32>
    %63 = vector.extract_strided_slice %47 {offsets = [0, 5], sizes = [8, 11], strides = [1, 1]} : vector<8x16xf32> to vector<8x11xf32>
    %cst_16 = arith.constant 0.000000e+00 : f32
    %64 = vector.broadcast %cst_16 : f32 to vector<8x5xf32>
    %65 = tpu.concatenate %63, %64 in 1 : vector<8x11xf32>, vector<8x5xf32> -> vector<8x16xf32>
    %cst_17 = arith.constant 0.000000e+00 : f32
    %66 = vector.shape_cast %52 : vector<1x16xi1> to vector<1x16xi1>
    %67 = vector.broadcast %66 : vector<1x16xi1> to vector<8x16xi1>
    %68 = vector.broadcast %cst_17 : f32 to vector<8x16xf32>
    %69 = arith.select %67, %65, %68 : vector<8x16xi1>, vector<8x16xf32>
    %cst_18 = arith.constant 1.000000e+00 : f32
    %70 = vector.broadcast %cst_18 : f32 to vector<1x16xf32>
    %71 = tpu.concatenate %47, %59, %62, %69, %70 in 0 : vector<8x16xf32>, vector<8x16xf32>, vector<8x16xf32>, vector<8x16xf32>, vector<1x16xf32> -> vector<33x16xf32>
    %c0_19 = arith.constant 0 : index
    %c0_20 = arith.constant 0 : index
    %72 = vector.load %arg3[%c0_19, %c0_20] : memref<64x33xf32, #tpu.memory_space<vmem>>, vector<64x33xf32>
    %cst_21 = arith.constant dense<0.000000e+00> : vector<64x16xf32>
    %73 = tpu.matmul %72, %71, %cst_21 {dimension_numbers = #tpu.dot_dimension_numbers<[1], [0], [0], [1], [0, 0, 1, 1], [], []>} : vector<64x33xf32>, vector<33x16xf32>, vector<64x16xf32> -> vector<64x16xf32>
    %74 = vector.extract_strided_slice %73 {offsets = [0, 0], sizes = [16, 16], strides = [1, 1]} : vector<64x16xf32> to vector<16x16xf32>
    %75 = vector.extract_strided_slice %73 {offsets = [16, 0], sizes = [16, 16], strides = [1, 1]} : vector<64x16xf32> to vector<16x16xf32>
    %76 = vector.extract_strided_slice %73 {offsets = [32, 0], sizes = [16, 16], strides = [1, 1]} : vector<64x16xf32> to vector<16x16xf32>
    %77 = vector.extract_strided_slice %73 {offsets = [48, 0], sizes = [16, 16], strides = [1, 1]} : vector<64x16xf32> to vector<16x16xf32>
    %78 = tpu.concatenate %74, %75, %76, %77 in 1 : vector<16x16xf32>, vector<16x16xf32>, vector<16x16xf32>, vector<16x16xf32> -> vector<16x64xf32>
    %c0_22 = arith.constant 0 : index
    %c0_23 = arith.constant 0 : index
    %79 = vector.load %arg4[%c0_22, %c0_23] : memref<64x64xbf16, #tpu.memory_space<vmem>>, vector<64x64xbf16>
    %80 = arith.extf %79 : vector<64x64xbf16> to vector<64x64xf32>
    %cst_24 = arith.constant dense<0.000000e+00> : vector<16x64xf32>
    %81 = tpu.matmul %78, %80, %cst_24 {dimension_numbers = #tpu.dot_dimension_numbers<[1], [0], [0], [1], [0, 0, 1, 1], [], []>} : vector<16x64xf32>, vector<64x64xf32>, vector<16x64xf32> -> vector<16x64xf32>
    %82 = vector.extract_strided_slice %0 {offsets = [16, 0], sizes = [8, 1], strides = [1, 1]} : vector<32x1xf32> to vector<8x1xf32>
    %83 = vector.extract_strided_slice %0 {offsets = [24, 0], sizes = [8, 1], strides = [1, 1]} : vector<32x1xf32> to vector<8x1xf32>
    %cst_25 = arith.constant dense<0.000000e+00> : vector<16xf32>
    %84 = vector.multi_reduction <add>, %81, %cst_25 [1] : vector<16x64xf32> to vector<16xf32>
    %85 = vector.shape_cast %84 : vector<16xf32> to vector<16x1xf32>
    %86 = arith.mulf %81, %81 : vector<16x64xf32>
    %cst_26 = arith.constant dense<0.000000e+00> : vector<16xf32>
    %87 = vector.multi_reduction <add>, %86, %cst_26 [1] : vector<16x64xf32> to vector<16xf32>
    %88 = vector.shape_cast %87 : vector<16xf32> to vector<16x1xf32>
    %89 = vector.extract_strided_slice %85 {offsets = [0, 0], sizes = [8, 1], strides = [1, 1]} : vector<16x1xf32> to vector<8x1xf32>
    %90 = vector.extract_strided_slice %88 {offsets = [0, 0], sizes = [8, 1], strides = [1, 1]} : vector<16x1xf32> to vector<8x1xf32>
    %91 = vector.extract_strided_slice %85 {offsets = [8, 0], sizes = [8, 1], strides = [1, 1]} : vector<16x1xf32> to vector<8x1xf32>
    %92 = arith.addf %89, %91 : vector<8x1xf32>
    %93 = vector.extract_strided_slice %88 {offsets = [8, 0], sizes = [8, 1], strides = [1, 1]} : vector<16x1xf32> to vector<8x1xf32>
    %94 = arith.addf %90, %93 : vector<8x1xf32>
    %cst_27 = arith.constant 7.812500e-03 : f32
    %95 = vector.broadcast %cst_27 : f32 to vector<8x1xf32>
    %96 = arith.mulf %92, %95 : vector<8x1xf32>
    %cst_28 = arith.constant 7.812500e-03 : f32
    %97 = vector.broadcast %cst_28 : f32 to vector<8x1xf32>
    %98 = arith.mulf %94, %97 : vector<8x1xf32>
    %99 = arith.mulf %96, %96 : vector<8x1xf32>
    %100 = arith.subf %98, %99 : vector<8x1xf32>
    %cst_29 = arith.constant 9.99999974E-6 : f32
    %101 = vector.broadcast %cst_29 : f32 to vector<8x1xf32>
    %102 = arith.addf %100, %101 : vector<8x1xf32>
    %103 = math.rsqrt %102 : vector<8x1xf32>
    %104 = arith.mulf %82, %103 : vector<8x1xf32>
    %105 = arith.mulf %96, %104 : vector<8x1xf32>
    %106 = arith.subf %83, %105 : vector<8x1xf32>
    %107 = tpu.concatenate %104, %104 in 0 : vector<8x1xf32>, vector<8x1xf32> -> vector<16x1xf32>
    %108 = tpu.concatenate %106, %106 in 0 : vector<8x1xf32>, vector<8x1xf32> -> vector<16x1xf32>
    %109 = vector.broadcast %107 : vector<16x1xf32> to vector<16x64xf32>
    %110 = arith.mulf %81, %109 : vector<16x64xf32>
    %111 = vector.broadcast %108 : vector<16x1xf32> to vector<16x64xf32>
    %112 = arith.addf %110, %111 : vector<16x64xf32>
    %cst_30 = arith.constant 0.000000e+00 : f32
    %113 = vector.broadcast %cst_30 : f32 to vector<16x64xf32>
    %114 = arith.maximumf %112, %113 : vector<16x64xf32>
    %115 = tpu.iota {dimensions = array<i32: 1>} : vector<1x64xi32>
    %c7_i32 = arith.constant 7 : i32
    %116 = vector.broadcast %c7_i32 : i32 to vector<1x64xi32>
    %117 = arith.andi %115, %116 : vector<1x64xi32>
    %c7_i32_31 = arith.constant 7 : i32
    %118 = vector.broadcast %c7_i32_31 : i32 to vector<1x64xi32>
    %119 = arith.cmpi ne, %117, %118 : vector<1x64xi32>
    %120 = vector.extract_strided_slice %114 {offsets = [0, 1], sizes = [16, 63], strides = [1, 1]} : vector<16x64xf32> to vector<16x63xf32>
    %cst_32 = arith.constant 0.000000e+00 : f32
    %121 = vector.broadcast %cst_32 : f32 to vector<16x1xf32>
    %122 = tpu.concatenate %120, %121 in 1 : vector<16x63xf32>, vector<16x1xf32> -> vector<16x64xf32>
    %cst_33 = arith.constant 0.000000e+00 : f32
    %123 = vector.shape_cast %119 : vector<1x64xi1> to vector<1x64xi1>
    %124 = vector.broadcast %123 : vector<1x64xi1> to vector<16x64xi1>
    %125 = vector.broadcast %cst_33 : f32 to vector<16x64xf32>
    %126 = arith.select %124, %122, %125 : vector<16x64xi1>, vector<16x64xf32>
    %127 = vector.extract_strided_slice %114 {offsets = [0, 8], sizes = [16, 56], strides = [1, 1]} : vector<16x64xf32> to vector<16x56xf32>
    %cst_34 = arith.constant 0.000000e+00 : f32
    %128 = vector.broadcast %cst_34 : f32 to vector<16x8xf32>
    %129 = tpu.concatenate %127, %128 in 1 : vector<16x56xf32>, vector<16x8xf32> -> vector<16x64xf32>
    %130 = vector.extract_strided_slice %114 {offsets = [0, 9], sizes = [16, 55], strides = [1, 1]} : vector<16x64xf32> to vector<16x55xf32>
    %cst_35 = arith.constant 0.000000e+00 : f32
    %131 = vector.broadcast %cst_35 : f32 to vector<16x9xf32>
    %132 = tpu.concatenate %130, %131 in 1 : vector<16x55xf32>, vector<16x9xf32> -> vector<16x64xf32>
    %cst_36 = arith.constant 0.000000e+00 : f32
    %133 = vector.shape_cast %119 : vector<1x64xi1> to vector<1x64xi1>
    %134 = vector.broadcast %133 : vector<1x64xi1> to vector<16x64xi1>
    %135 = vector.broadcast %cst_36 : f32 to vector<16x64xf32>
    %136 = arith.select %134, %132, %135 : vector<16x64xi1>, vector<16x64xf32>
    %cst_37 = arith.constant 1.000000e+00 : f32
    %137 = vector.broadcast %cst_37 : f32 to vector<1x64xf32>
    %138 = tpu.concatenate %114, %126, %129, %136, %137 in 0 : vector<16x64xf32>, vector<16x64xf32>, vector<16x64xf32>, vector<16x64xf32>, vector<1x64xf32> -> vector<65x64xf32>
    %c0_38 = arith.constant 0 : index
    %c0_39 = arith.constant 0 : index
    %139 = vector.load %arg5[%c0_38, %c0_39] : memref<32x65xf32, #tpu.memory_space<vmem>>, vector<32x65xf32>
    %cst_40 = arith.constant dense<0.000000e+00> : vector<32x64xf32>
    %140 = tpu.matmul %139, %138, %cst_40 {dimension_numbers = #tpu.dot_dimension_numbers<[1], [0], [0], [1], [0, 0, 1, 1], [], []>} : vector<32x65xf32>, vector<65x64xf32>, vector<32x64xf32> -> vector<32x64xf32>
    %141 = vector.extract_strided_slice %140 {offsets = [0, 0], sizes = [6, 64], strides = [1, 1]} : vector<32x64xf32> to vector<6x64xf32>
    %142 = vector.extract_strided_slice %140 {offsets = [8, 0], sizes = [6, 64], strides = [1, 1]} : vector<32x64xf32> to vector<6x64xf32>
    %143 = vector.extract_strided_slice %140 {offsets = [16, 0], sizes = [6, 64], strides = [1, 1]} : vector<32x64xf32> to vector<6x64xf32>
    %144 = vector.extract_strided_slice %140 {offsets = [24, 0], sizes = [6, 64], strides = [1, 1]} : vector<32x64xf32> to vector<6x64xf32>
    %145 = tpu.concatenate %141, %142, %143, %144 in 1 : vector<6x64xf32>, vector<6x64xf32>, vector<6x64xf32>, vector<6x64xf32> -> vector<6x256xf32>
    %c0_41 = arith.constant 0 : index
    %c0_42 = arith.constant 0 : index
    %146 = vector.load %arg6[%c0_41, %c0_42] : memref<256x256xbf16, #tpu.memory_space<vmem>>, vector<256x256xbf16>
    %147 = arith.extf %146 : vector<256x256xbf16> to vector<256x256xf32>
    %cst_43 = arith.constant dense<0.000000e+00> : vector<6x256xf32>
    %148 = tpu.matmul %145, %147, %cst_43 {dimension_numbers = #tpu.dot_dimension_numbers<[1], [0], [0], [1], [0, 0, 1, 1], [], []>} : vector<6x256xf32>, vector<256x256xf32>, vector<6x256xf32> -> vector<6x256xf32>
    %149 = arith.negf %148 : vector<6x256xf32>
    %150 = math.exp %149 : vector<6x256xf32>
    %cst_44 = arith.constant 1.000000e+00 : f32
    %151 = vector.broadcast %cst_44 : f32 to vector<6x256xf32>
    %152 = arith.addf %151, %150 : vector<6x256xf32>
    %153 = arith.divf %151, %152 : vector<6x256xf32>
    %c0_45 = arith.constant 0 : index
    %c0_46 = arith.constant 0 : index
    %154 = vector.load %arg7[%c0_45, %c0_46] : memref<6x256xf32, #tpu.memory_space<vmem>>, vector<6x256xf32>
    tpu.vector_store %arg7[%c0_45, %c0_46], %153 {strides = array<i32>} : memref<6x256xf32, #tpu.memory_space<vmem>>, vector<6x256xf32>,
    return
  }
}

</mosaic_0001>

<bundles_post_ra>
// kernel: decoder_forward.1
= control target key start
LH: loop header
LB: loop body
LE: loop exit
PB: predicated region body
PF: predicated region fallthrough
CT: control target
= control target key end

     0   :  { %12 = vsyncpa [#allocation3], 0  ;;  %s1112_s24 = smov [#allocation2]   ;;  %s1326_s0 = inlined_call_operand.vmem [shape: f32[2,32], index: 0, kind: input, shape index: {}]   ;;  %s1327_s1 = inlined_call_operand.vmem [shape: f32[33,64], index: 1, kind: input, shape index: {}]   ;;  %s1328_s2 = inlined_call_operand.vmem [shape: f32[32,1], index: 2, kind: input, shape index: {}]   ;;  %s1329_s3 = inlined_call_operand.vmem [shape: f32[64,33], index: 3, kind: input, shape index: {}]   ;;  %s1330_s4 = inlined_call_operand.vmem [shape: bf16[64,64], index: 4, kind: input, shape index: {}]   ;;  %s1331_s5 = inlined_call_operand.vmem [shape: f32[32,65], index: 5, kind: input, shape index: {}]   ;;  %s1332_s6 = inlined_call_operand.hbm [shape: bf16[256,256], index: 6, kind: input, shape index: {}]   ;;  %s1333_s7 = inlined_call_operand.vmem [shape: f32[6,256], index: 7, kind: output, shape index: {}]  }
   0x1   :  { %s30_s25 = sshll.u32 %s1112_s24, 4  ;;  %s31_s25 = int_to_ptr.vmem [resolvable:$true] %s30_s25 }
   0x2   :  { %s1098_s26 = scalar_lea.vmem %s31_s25, 4096  ;;  %p1103_p1 = scmp.lt.s32.totalorder %s31_s25, %s31_s25 }
   0x3   :  { %p1099_p0 = scmp.ne.s32.totalorder %s31_s25, %s1098_s26  ;;  %p1104_p2 = scmp.lt.s32.totalorder %s1098_s26, %s1098_s26 }
   0x5   :  { %p1105_p3 = por %p1104_p2, %p1103_p1 }
   0x7   :  { %p1106_p4 = pnand %p1105_p3, %p1099_p0 }
   0x9   :  { %1109 = shalt.err (!%p1106_p4)
}
   0xa   :  { %s1113_s27 = smov 128   ;;  %s1114_s28 = smov 8  }
   0xb   :  { %36 = dma.hbm_to_vmem [thread:$0]  %s1332_s6, 4096, %s31_s25, [#allocation3], %s1113_s27, %s1113_s27, %s1114_s28  }
   0xc   :  { %1110 = dma.done.wait [#allocation3], 4096  }
   0xd   :  { %1111 = vsyncadd [#allocation3], 4294963200  ;;  %v1115_v0 = vmov 0.0   ;;  %vm1116_vm0 = vmmov 0   ;;  %vm56_vm1 = vcmask 1040384   ;;  %v50_v2 = vld [vmem:[%s1327_s1 + $0x18] sm:$0xff]  ;;  %v215_v61 = vlaneseq }
   0xe   :  { %974 = vmatprep.subr.mxu1 %v1115_v0  ;;  %984 = vmatprep.mubr.msk.f32.mxu1 %vm1116_vm0, %v1115_v0  ;;  %v51_v1 = vld [vmem:[%s1327_s1 + $0x20] sm:$0x1]  ;;  %v49_v3 = vld [vmem:[%s1327_s1 + $0x10] sm:$0xff]  ;;  %v48_v4 = vld [vmem:[%s1327_s1 + $0x8] sm:$0xff]  ;;  %vm45_vm2 = vcmask 261120   ;;  %vm52_vm3 = vcmask 269312  }
   0xf   :  { %975 = vmatpush3.msk.msra.mxu1 %vm56_vm1, %v51_v1  ;;  %v44_v5 = vld [vmem:[%s1326_s0] sm:$0x3]  ;;  %s1117_s0 = smov 80   ;;  %s1118_s19 = smov 112   ;;  %vm157_vm4 = vcmask 1041408   ;;  %vm159_vm5 = vcmask 1042432  }
  0x10   :  { %976 = vmatprep.subr.mxu1 %v1115_v0  ;;  %v47_v6 = vld [vmem:[%s1327_s1] sm:$0xff]  ;;  %v46_v7 = vsel %vm45_vm2, %v44_v5, 1.0  ;;  %s1119_s1 = smov 96   ;;  %vm161_vm6 = vcmask 1043456   ;;  %vm163_vm7 = vcmask 1044480   ;;  %vm165_vm8 = vcmask 1045504  }
  0x11   :  { %977 = vmatpush3.msra.mxu1 %v50_v2  ;;  %vm167_vm9 = vcmask 1046528   ;;  %vm169_vm10 = vcmask 130048   ;;  %v1120_v32 = vmov 0   ;;  %v40_v44 = vld [vmem:[%s1328_s2] sm:$0xff]  ;;  %v41_v47 = vld [vmem:[%s1328_s2 + $0x8] sm:$0xff]  ;;  %v1121_v54 = vmov 1.0  }
  0x12   :  { %978 = vmatprep.subr.mxu1 %v1115_v0  ;;  %1071 = vset.pattern.permute.xlu0 %v1120_v32  ;;  %v239_v60 = vld [vmem:[%s1329_s3] sm:$0xff]  ;;  %s1122_s26 = smov 123   ;;  %s1123_s27 = smov 124   ;;  %v1216_v62 = vand.u32 127, %v215_v61  ;;  %vm236_vm11 = vcmask 89088   ;;  %vm231_vm13 = vcmask 97280  }
  0x13   :  { %979 = vmatpush3.msra.mxu1 %v49_v3  ;;  %1072 = vset.pattern.permute.xlu1 %v1120_v32  ;;  %s1124_s28 = smov 127   ;;  %vm223_vm14 = vcmask 121856   ;;  %v240_v5 = vld [vmem:[%s1329_s3 + $0x8] sm:$0xff]  ;;  %s1125_s24 = smov 16   ;;  %vm407_vm15 = vcmask 392192   ;;  %vm426_vm0 = vcmask 523264  }
  0x14   :  { %980 = vmatprep.subr.mxu1 %v1115_v0  ;;  %v217_v63 = vand.u32 3, %v1216_v62  ;;  %s1126_s25 = smov 32   ;;  %s1128_s8 = smov 119  }
  0x15   :  { %981 = vmatpush3.msra.mxu1 %v48_v4 }
  0x16   :  { %982 = vmatprep.subr.mxu1 %v1115_v0  ;;  %vm218_vm12 = vcmp.ne.s32.totalorder %v217_v63, 3 }
  0x17   :  { %983 = vmatpush3.msra.mxu1 %v47_v6  ;;  %v241_v6 = vld [vmem:[%s1329_s3 + $0x10] sm:$0xff] }
  0x18   :  { %985 = vmatmul.mubr.msk.f32.vlgmr.msra.gmra.mxu1 %vm52_vm3, %v46_v7  ;;  %987 = vmatprep.subr.msk.mxu1 %vm56_vm1, %v1121_v54  ;;  %v242_v7 = vld [vmem:[%s1329_s3 + $0x18] sm:$0xff] }
  0x19   :  { %988 = vmatpush3.msk.msra.mxu1 %vm56_vm1, %v1121_v54  ;;  %997 = vmatprep.mubr.msk.f32.mxu1 %vm52_vm3, %v239_v60 }
  0xd8   :  { %v126_v8 = vpop.f32.mrf.mxu1 }
  0xd9   :  { %v139_v9 = vrot.slane %v126_v8, 5  ;;  %v131_v10 = vrot.slane %v126_v8, 7  ;;  %v144_v12 = vrot.slane %v126_v8, 4  ;;  %v135_v13 = vrot.slane %v126_v8, 6 }
  0xda   :  { %v986_v11 = vpop.f32.mrf.mxu1  ;;  %v152_v14 = vrot.slane %v126_v8, 2  ;;  %v148_v15 = vrot.slane %v126_v8, 3 }
  0xdb   :  { %140 = vrot.lane.b32.xlu1 %v139_v9, %s1117_s0  ;;  %132 = vrot.lane.b32.xlu0 %v131_v10, %s1118_s19  ;;  %v245_v10 = vld [vmem:[%s1329_s3 + $0x30] sm:$0xff]  ;;  %v246_v11 = vld [vmem:[%s1329_s3 + $0x38] sm:$0xff] }
  0xdf   :  { %145 = vrot.lane.b32.xlu1 %v144_v12, %s1118_s19  ;;  %136 = vrot.lane.b32.xlu0 %v135_v13, %s1119_s1  ;;  %v931_v12 = vld [vmem:[%s1330_s4 + $0x18] sm:$0xff]  }
  0xe0   :  { %v928_v13 = vunpack.c.h.bf16 %v931_v12 }
  0xe3   :  { %153 = vrot.lane.b32.xlu1 %v152_v14, %s1117_s0  ;;  %149 = vrot.lane.b32.xlu0 %v148_v15, %s1119_s1  ;;  %v927_v14 = vunpack.c.l.bf16 %v931_v12  ;;  %v930_v15 = vld [vmem:[%s1330_s4 + $0x10] sm:$0xff]  }
 0x14d   :  { %v141_v16 = vpop.permute.xlu1 %140  ;;  %v133_v17 = vpop.permute.xlu0 %132 }
 0x14e   :  { %v156_v18 = vsel %vm56_vm1, %v126_v8, %v133_v17  ;;  %v243_v8 = vld [vmem:[%s1329_s3 + $0x20] sm:$0xff]  ;;  %v923_v17 = vunpack.c.l.bf16 %v930_v15 }
 0x151   :  { %v146_v19 = vpop.permute.xlu1 %145  ;;  %v137_v20 = vpop.permute.xlu0 %136 }
 0x152   :  { %v158_v21 = vsel %vm157_vm4, %v156_v18, %v137_v20  ;;  %v929_v18 = vld [vmem:[%s1330_s4 + $0x8] sm:$0xff]   ;;  %vm572_vm4 = vcmask 457728  }
 0x153   :  { %v160_v22 = vsel %vm159_vm5, %v158_v21, %v141_v16  ;;  %v924_v16 = vunpack.c.h.bf16 %v930_v15  ;;  %v919_v20 = vunpack.c.l.bf16 %v929_v18  ;;  %v549_v15 = vand.u32 7, %v1216_v62 }
 0x154   :  { %v162_v23 = vsel %vm161_vm6, %v160_v22, %v139_v9  ;;  %v244_v9 = vld [vmem:[%s1329_s3 + $0x28] sm:$0xff]  ;;  %v914_v22 = vld [vmem:[%s1330_s4] sm:$0xff]   ;;  %s1127_s4 = smov 48   ;;  %vm559_vm5 = vcmask 515072  }
 0x155   :  { %v154_v24 = vpop.permute.xlu1 %153  ;;  %v164_v25 = vsel %vm163_vm7, %v162_v23, %v146_v19  ;;  %v150_v26 = vpop.permute.xlu0 %149  ;;  %v920_v19 = vunpack.c.h.bf16 %v929_v18  ;;  %v916_v23 = vunpack.c.h.bf16 %v914_v22 }
 0x156   :  { %v166_v27 = vsel %vm165_vm8, %v164_v25, %v150_v26 }
 0x157   :  { %v168_v28 = vsel %vm167_vm9, %v166_v27, %v154_v24  ;;  %v915_v24 = vunpack.c.l.bf16 %v914_v22 }
 0x158   :  { %v170_v29 = vsel %vm169_vm10, %v168_v28, 0.0  ;;  %v173_v30 = vmul.f32 %v168_v28, %v168_v28 }
 0x159   :  { %171 = vadd.xlane.f32.xlu0 %v170_v29 }
 0x15a   :  { %v174_v31 = vsel %vm169_vm10, %v173_v30, 0.0 }
 0x15b   :  { %175 = vadd.xlane.f32.xlu1 %v174_v31 }
 0x1e2   :  { %v172_v33 = vpop.xlane.xlu0 %171 }
 0x1e3   :  { %v178_v34 = vrot.slane %v172_v33, 4 }
 0x1e4   :  { %v176_v35 = vpop.xlane.xlu1 %175 }
 0x1e5   :  { %v180_v36 = vadd.f32 %v178_v34, %v172_v33  ;;  %v182_v37 = vrot.slane %v176_v35, 4 }
 0x1e7   :  { %v185_v38 = vmul.f32 0.03125, %v180_v36  ;;  %v184_v39 = vadd.f32 %v182_v37, %v176_v35 }
 0x1e9   :  { %v187_v40 = vmul.f32 %v185_v38, %v185_v38  ;;  %v186_v41 = vmul.f32 0.03125, %v184_v39 }
 0x1eb   :  { %v188_v42 = vsub.f32 %v186_v41, %v187_v40 }
 0x1ed   :  { %v189_v43 = vadd.f32 1e-05, %v188_v42 }
 0x1ef   :  { %1078 = vrsqrt.f32 %v189_v43 }
 0x1fc   :  { %v1079_v45 = vpop.eup %1078 }
 0x1fd   :  { %v191_v46 = vmul.f32 %v1079_v45, %v40_v44 }
 0x1ff   :  { %v195_v48 = vrot.slane %v191_v46, 4  ;;  %v192_v49 = vmul.f32 %v191_v46, %v185_v38 }
 0x201   :  { %v197_v50 = vsel %vm161_vm6, %v191_v46, %v195_v48  ;;  %v193_v51 = vsub.f32 %v41_v47, %v192_v49 }
 0x202   :  { %204 = vperm.xlu0 %1071, %v197_v50  }
 0x203   :  { %v199_v52 = vrot.slane %v193_v51, 4 }
 0x205   :  { %v201_v53 = vsel %vm161_vm6, %v193_v51, %v199_v52 }
 0x206   :  { %210 = vperm.xlu1 %1072, %v201_v53  }
 0x27d   :  { %v205_v55 = vpop.permute.xlu0 %204 }
 0x27e   :  { %v207_v56 = vmul.f32 %v205_v55, %v168_v28 }
 0x281   :  { %v211_v57 = vpop.permute.xlu1 %210 }
 0x282   :  { %v213_v58 = vadd.f32 %v211_v57, %v207_v56 }
 0x284   :  { %v214_v59 = vmax.f32 %v213_v58, 0.0 }
 0x286   :  { %233 = vrot.lane.b32.xlu1 %v214_v59, %s1122_s26 }
 0x28a   :  { %228 = vrot.lane.b32.xlu1 %v214_v59, %s1123_s27 }
 0x28e   :  { %220 = vrot.lane.b32.xlu1 %v214_v59, %s1124_s28 }
 0x2f8   :  { %v234_v0 = vpop.permute.xlu1 %233 }
 0x2f9   :  { %v237_v1 = vsel %vm236_vm11, %v234_v0, 0.0  ;;  %v42_v0 = vld [vmem:[%s1328_s2 + $0x10] sm:$0xff] }
 0x2fa   :  { %989 = vmatprep.subr.msk.mxu1 %vm218_vm12, %v237_v1 }
 0x2fb   :  { %990 = vmatpush3.msk.msra.mxu1 %vm218_vm12, %v237_v1 }
 0x2fc   :  { %v229_v2 = vpop.permute.xlu1 %228 }
 0x2fd   :  { %991 = vmatprep.subr.msk.mxu1 %vm231_vm13, %v229_v2 }
 0x2fe   :  { %992 = vmatpush3.msk.msra.mxu1 %vm231_vm13, %v229_v2 }
 0x300   :  { %v221_v3 = vpop.permute.xlu1 %220 }
 0x301   :  { %v224_v4 = vsel %vm223_vm14, %v221_v3, 0.0  ;;  %v43_v3 = vld [vmem:[%s1328_s2 + $0x18] sm:$0xff]  ;;  %s1129_s2 = smov 120  }
 0x302   :  { %993 = vmatprep.subr.msk.mxu1 %vm218_vm12, %v224_v4 }
 0x303   :  { %994 = vmatpush3.msk.msra.mxu1 %vm218_vm12, %v224_v4 }
 0x304   :  { %995 = vmatprep.subr.mxu1 %v214_v59 }
 0x305   :  { %996 = vmatpush3.msra.mxu1 %v214_v59 }
 0x306   :  { %998 = vmatmul.mubr.msk.f32.vlgmr.msra.gmra.mxu1 %vm52_vm3, %v240_v5  ;;  %1009 = vmatprep.subr.mxu1 %v928_v13 }
 0x307   :  { %1000 = vmatprep.mubr.msk.f32.mxu1 %vm52_vm3, %v241_v6  ;;  %1010 = vmatpush3.msra.mxu1 %v928_v13 }
 0x308   :  { %1011 = vmatprep.subr.mxu1 %v927_v14 }
 0x309   :  { %1012 = vmatpush3.msra.mxu1 %v927_v14  ;;  %v586_v14 = vld [vmem:[%s1331_s5] sm:$0xff] }
 0x30a   :  { %1001 = vmatmul.mubr.msk.f32.gmra.mxu1 %vm52_vm3, %v242_v7  ;;  %1013 = vmatprep.subr.mxu1 %v924_v16 }
 0x30b   :  { %1003 = vmatprep.mubr.msk.f32.mxu1 %vm52_vm3, %v243_v8  ;;  %1014 = vmatpush3.msra.mxu1 %v924_v16 }
 0x30c   :  { %1015 = vmatprep.subr.mxu1 %v923_v17 }
 0x30d   :  { %1016 = vmatpush3.msra.mxu1 %v923_v17 }
 0x30e   :  { %1004 = vmatmul.mubr.msk.f32.gmra.mxu1 %vm52_vm3, %v244_v9  ;;  %1017 = vmatprep.subr.mxu1 %v920_v19 }
 0x30f   :  { %1006 = vmatprep.mubr.msk.f32.mxu1 %vm52_vm3, %v245_v10  ;;  %1018 = vmatpush3.msra.mxu1 %v920_v19 }
 0x310   :  { %1019 = vmatprep.subr.mxu1 %v919_v20 }
 0x311   :  { %1020 = vmatpush3.msra.mxu1 %v919_v20 }
 0x312   :  { %1007 = vmatmul.mubr.msk.f32.gmra.mxu1 %vm52_vm3, %v246_v11  ;;  %1021 = vmatprep.subr.mxu1 %v916_v23  ;;  %vm1286_vm3 = vcmp.ne.s32.totalorder %v549_v15, 7  ;;  %v728_v15 = vld [vmem:[#allocation2 + $0xf0] sm:$0xff] }
 0x313   :  { %1022 = vmatpush3.msra.mxu1 %v916_v23 }
 0x314   :  { %1023 = vmatprep.subr.mxu1 %v915_v24 }
 0x315   :  { %1024 = vmatpush3.msra.mxu1 %v915_v24 }
 0x316   :  { %1028 = vmatprep.subr.msk.mxu1 %vm56_vm1, %v1121_v54 }
 0x3c6   :  { %v999_v21 = vpop.f32.mrf.mxu1 }
 0x3c8   :  { %v340_v25 = vpop.f32.mrf.mxu1 }
 0x3ca   :  { %v1002_v26 = vpop.f32.mrf.mxu1 }
 0x3cb   :  { %383 = vrot.lane.b32.xlu1 %v1002_v26, %s1125_s24  ;;  %v587_v26 = vld [vmem:[%s1331_s5 + $0x8] sm:$0xff] }
 0x3cc   :  { %v350_v27 = vpop.f32.mrf.mxu1 }
 0x3ce   :  { %v1005_v28 = vpop.f32.mrf.mxu1 }
 0x3cf   :  { %381 = vrot.lane.b32.xlu1 %v350_v27, %s1125_s24  ;;  %391 = vrot.lane.b32.xlu0 %v1005_v28, %s1126_s25  ;;  %v588_v27 = vld [vmem:[%s1331_s5 + $0x10] sm:$0xff]  ;;  %v589_v28 = vld [vmem:[%s1331_s5 + $0x18] sm:$0xff]  ;;  %s1130_s5 = smov 64  }
 0x3d0   :  { %v360_v29 = vpop.f32.mrf.mxu1 }
 0x3d2   :  { %v1008_v30 = vpop.f32.mrf.mxu1 }
 0x3d3   :  { %389 = vrot.lane.b32.xlu1 %v360_v29, %s1126_s25  ;;  %399 = vrot.lane.b32.xlu0 %v1008_v30, %s1127_s4  ;;  %v713_v29 = vld [vmem:[#allocation2 + $0x78] sm:$0xff]  ;;  %v712_v30 = vld [vmem:[#allocation2 + $0x70] sm:$0xff] }
 0x3d4   :  { %v370_v31 = vpop.f32.mrf.mxu1 }
 0x3d7   :  { %397 = vrot.lane.b32.xlu1 %v370_v31, %s1127_s4  ;;  %v711_v31 = vld [vmem:[#allocation2 + $0x68] sm:$0xff] }
 0x43d   :  { %v384_v32 = vpop.permute.xlu1 %383 }
 0x43e   :  { %v404_v38 = vsel %vm169_vm10, %v999_v21, %v384_v32  ;;  %v761_v32 = vunpack.c.h.bf16 %v713_v29 }
 0x440   :  { %794 = vmatprep.subr.mxu0 %v761_v32  ;;  %v722_v32 = vld [vmem:[#allocation2 + $0xc0] sm:$0xff] }
 0x441   :  { %v382_v33 = vpop.permute.xlu1 %381  ;;  %v392_v34 = vpop.permute.xlu0 %391 }
 0x442   :  { %v403_v36 = vsel %vm169_vm10, %v340_v25, %v382_v33  ;;  %v406_v41 = vsel %vm45_vm2, %v404_v38, %v392_v34  ;;  %v760_v33 = vunpack.c.l.bf16 %v713_v29  ;;  %v759_v34 = vunpack.c.h.bf16 %v712_v30  ;;  %v723_v29 = vld [vmem:[#allocation2 + $0xc8] sm:$0xff] }
 0x443   :  { %v756_v38 = vunpack.c.l.bf16 %v711_v31 }
 0x444   :  { %795 = vmatpush1.msra.mxu0 %v760_v33  ;;  %v781_v33 = vunpack.c.h.bf16 %v723_v29 }
 0x445   :  { %v390_v35 = vpop.permute.xlu1 %389  ;;  %v400_v37 = vpop.permute.xlu0 %399  ;;  %796 = vmatprep.subr.mxu0 %v759_v34  ;;  %v780_v34 = vunpack.c.l.bf16 %v723_v29 }
 0x446   :  { %v405_v39 = vsel %vm45_vm2, %v403_v36, %v390_v35  ;;  %v409_v43 = vsel %vm407_vm15, %v406_v41, %v400_v37  ;;  %vm581_vm2 = vcmask 449536   ;;  %v758_v35 = vunpack.c.l.bf16 %v712_v30  ;;  %v710_v36 = vld [vmem:[#allocation2 + $0x60] sm:$0xff] }
 0x447   :  { %v757_v37 = vunpack.c.h.bf16 %v711_v31  ;;  %v754_v41 = vunpack.c.l.bf16 %v710_v36 }
 0x448   :  { %797 = vmatpush1.msra.mxu0 %v758_v35  ;;  %v721_v35 = vld [vmem:[#allocation2 + $0xb8] sm:$0xff] }
 0x449   :  { %v398_v40 = vpop.permute.xlu1 %397  ;;  %798 = vmatprep.subr.mxu0 %v757_v37  ;;  %v778_v37 = vunpack.c.l.bf16 %v722_v32 }
 0x44a   :  { %v408_v42 = vsel %vm407_vm15, %v405_v39, %v398_v40  ;;  %v709_v39 = vld [vmem:[#allocation2 + $0x58] sm:$0xff]  ;;  %v755_v40 = vunpack.c.h.bf16 %v710_v36  ;;  %799 = vmatpush1.msra.mxu0 %v756_v38  ;;  %v779_v36 = vunpack.c.h.bf16 %v722_v32  ;;  %v720_v38 = vld [vmem:[#allocation2 + $0xb0] sm:$0xff] }
 0x44b   :  { %1025 = vmatprep.mubr.msk.f32.mxu1 %vm426_vm0, %v408_v42  ;;  %v708_v42 = vld [vmem:[#allocation2 + $0x50] sm:$0xff] }
 0x44c   :  { %1026 = vmatmul.mubr.msk.f32.vlgmr.msra.gmra.mxu1 %vm426_vm0, %v409_v43  ;;  %v753_v43 = vunpack.c.h.bf16 %v709_v39  ;;  %800 = vmatprep.subr.mxu0 %v755_v40  ;;  %v776_v40 = vunpack.c.l.bf16 %v721_v35 }
 0x44d   :  { %1029 = vmatpush3.msk.msra.mxu1 %vm56_vm1, %v1121_v54  ;;  %vm590_vm1 = vcmask 531456   ;;  %801 = vmatpush1.msra.mxu0 %v754_v41  ;;  %v719_v41 = vld [vmem:[#allocation2 + $0xa8] sm:$0xff] }
 0x44e   :  { %1046 = vmatprep.mubr.msk.f32.mxu1 %vm590_vm1, %v586_v14  ;;  %802 = vmatprep.subr.mxu0 %v753_v43  ;;  %v774_v43 = vunpack.c.l.bf16 %v720_v38 }
 0x50c   :  { %v1027_v44 = vpop.f32.mrf.mxu1 }
 0x50d   :  { %v511_v45 = vsel %vm426_vm0, %v1027_v44, 0.0  ;;  %v515_v49 = vmul.f32 %v1027_v44, %v1027_v44 }
 0x50e   :  { %512 = vadd.xlane.f32.xlu0 %v511_v45  ;;  %v499_v46 = vpop.f32.mrf.mxu1  ;;  %v707_v45 = vld [vmem:[#allocation2 + $0x48] sm:$0xff] }
 0x50f   :  { %v508_v47 = vsel %vm426_vm0, %v499_v46, 0.0  ;;  %v514_v48 = vmul.f32 %v499_v46, %v499_v46  ;;  %v519_v51 = vsel %vm426_vm0, %v515_v49, 0.0  ;;  %v749_v49 = vunpack.c.h.bf16 %v707_v45 }
 0x510   :  { %509 = vadd.xlane.f32.xlu1 %v508_v47  ;;  %v750_v47 = vunpack.c.l.bf16 %v708_v42 }
 0x511   :  { %v516_v50 = vsel %vm426_vm0, %v514_v48, 0.0  ;;  %v706_v48 = vld [vmem:[#allocation2 + $0x40] sm:$0xff] }
 0x512   :  { %517 = vadd.xlane.f32.xlu0 %v516_v50  ;;  %v748_v50 = vunpack.c.l.bf16 %v707_v45  ;;  %v773_v45 = vunpack.c.h.bf16 %v719_v41 }
 0x514   :  { %520 = vadd.xlane.f32.xlu1 %v519_v51  ;;  %v705_v51 = vld [vmem:[#allocation2 + $0x38] sm:$0xff] }
 0x597   :  { %v513_v52 = vpop.xlane.xlu0 %512 }
 0x599   :  { %v510_v53 = vpop.xlane.xlu1 %509 }
 0x59a   :  { %v522_v55 = vadd.f32 %v513_v52, %v510_v53  ;;  %v747_v52 = vunpack.c.h.bf16 %v706_v48  ;;  %v746_v53 = vunpack.c.l.bf16 %v706_v48 }
 0x59b   :  { %v518_v56 = vpop.xlane.xlu0 %517 }
 0x59c   :  { %v524_v54 = vmul.f32 0.0078125, %v522_v55  ;;  %v704_v55 = vld [vmem:[#allocation2 + $0x30] sm:$0xff] }
 0x59d   :  { %v521_v57 = vpop.xlane.xlu1 %520 }
 0x59e   :  { %v523_v58 = vadd.f32 %v521_v57, %v518_v56  ;;  %v526_v59 = vmul.f32 %v524_v54, %v524_v54  ;;  %v744_v56 = vunpack.c.l.bf16 %v705_v51  ;;  %v703_v57 = vld [vmem:[#allocation2 + $0x28] sm:$0xff] }
 0x5a0   :  { %v525_v60 = vmul.f32 0.0078125, %v523_v58  ;;  %v743_v58 = vunpack.c.h.bf16 %v704_v55 }
 0x5a2   :  { %v527_v61 = vsub.f32 %v525_v60, %v526_v59  ;;  %v742_v59 = vunpack.c.l.bf16 %v704_v55  ;;  %v702_v60 = vld [vmem:[#allocation2 + $0x20] sm:$0xff] }
 0x5a4   :  { %v528_v63 = vadd.f32 1e-05, %v527_v61  ;;  %v741_v61 = vunpack.c.h.bf16 %v703_v57 }
 0x5a6   :  { %1080 = vrsqrt.f32 %v528_v63  ;;  %v740_v63 = vunpack.c.l.bf16 %v703_v57 }
 0x5b3   :  { %v1081_v1 = vpop.eup %1080 }
 0x5b4   :  { %v530_v2 = vmul.f32 %v1081_v1, %v42_v0  ;;  %v701_v0 = vld [vmem:[#allocation2 + $0x18] sm:$0xff]  ;;  %v739_v1 = vunpack.c.h.bf16 %v702_v60 }
 0x5b6   :  { %535 = vperm.xlu0 %1071, %v530_v2   ;;  %v531_v4 = vmul.f32 %v530_v2, %v524_v54  ;;  %v745_v54 = vunpack.c.h.bf16 %v705_v51  ;;  %v738_v2 = vunpack.c.l.bf16 %v702_v60 }
 0x5b8   :  { %v532_v5 = vsub.f32 %v43_v3, %v531_v4  ;;  %v700_v3 = vld [vmem:[#allocation2 + $0x10] sm:$0xff]  ;;  %v737_v4 = vunpack.c.h.bf16 %v701_v0 }
 0x5ba   :  { %542 = vperm.xlu1 %1072, %v532_v5   ;;  %v736_v5 = vunpack.c.l.bf16 %v701_v0 }
 0x631   :  { %v536_v6 = vpop.permute.xlu0 %535 }
 0x632   :  { %v538_v7 = vmul.f32 %v536_v6, %v499_v46  ;;  %v539_v8 = vmul.f32 %v1027_v44, %v536_v6  ;;  %v752_v44 = vunpack.c.l.bf16 %v709_v39  ;;  %v751_v46 = vunpack.c.h.bf16 %v708_v42  ;;  %v699_v6 = vld [vmem:[#allocation2 + $0x8] sm:$0xff] }
 0x633   :  { %v777_v39 = vunpack.c.h.bf16 %v721_v35  ;;  %v775_v42 = vunpack.c.h.bf16 %v720_v38 }
 0x634   :  { %803 = vmatpush1.msra.mxu0 %v752_v44  ;;  %v718_v44 = vld [vmem:[#allocation2 + $0xa0] sm:$0xff] }
 0x635   :  { %v543_v9 = vpop.permute.xlu1 %542  ;;  %804 = vmatprep.subr.mxu0 %v751_v46  ;;  %v772_v46 = vunpack.c.l.bf16 %v719_v41  ;;  %v771_v48 = vunpack.c.h.bf16 %v718_v44 }
 0x636   :  { %v545_v10 = vadd.f32 %v543_v9, %v538_v7  ;;  %v546_v11 = vadd.f32 %v543_v9, %v539_v8  ;;  %805 = vmatpush1.msra.mxu0 %v750_v47  ;;  %v735_v7 = vunpack.c.h.bf16 %v700_v3  ;;  %v734_v8 = vunpack.c.l.bf16 %v700_v3  ;;  %v698_v9 = vld [vmem:[#allocation2] sm:$0xff]  ;;  %v717_v47 = vld [vmem:[#allocation2 + $0x98] sm:$0xff] }
 0x637   :  { %806 = vmatprep.subr.mxu0 %v749_v49  ;;  %v730_v14 = vunpack.c.l.bf16 %v698_v9  ;;  %v770_v49 = vunpack.c.l.bf16 %v718_v44  ;;  %v769_v51 = vunpack.c.h.bf16 %v717_v47 }
 0x638   :  { %v547_v12 = vmax.f32 %v545_v10, 0.0  ;;  %v548_v13 = vmax.f32 %v546_v11, 0.0  ;;  %807 = vmatpush1.msra.mxu0 %v748_v50  ;;  %v733_v10 = vunpack.c.h.bf16 %v699_v6  ;;  %v732_v11 = vunpack.c.l.bf16 %v699_v6  ;;  %v716_v50 = vld [vmem:[#allocation2 + $0x90] sm:$0xff] }
 0x639   :  { %808 = vmatprep.subr.mxu0 %v747_v52  ;;  %v768_v52 = vunpack.c.l.bf16 %v717_v47  ;;  %v766_v55 = vunpack.c.l.bf16 %v716_v50 }
 0x63a   :  { %577 = vrot.lane.b32.xlu1 %v548_v13, %s1128_s8  ;;  %575 = vrot.lane.b32.xlu0 %v547_v12, %s1128_s8 }
 0x63b   :  { %809 = vmatpush1.msra.mxu0 %v746_v53  ;;  %v767_v53 = vunpack.c.h.bf16 %v716_v50 }
 0x63c   :  { %810 = vmatprep.subr.mxu0 %v745_v54  ;;  %v715_v54 = vld [vmem:[#allocation2 + $0x88] sm:$0xff] }
 0x63d   :  { %811 = vmatpush1.msra.mxu0 %v744_v56  ;;  %v765_v56 = vunpack.c.h.bf16 %v715_v54  ;;  %v764_v57 = vunpack.c.l.bf16 %v715_v54 }
 0x63e   :  { %568 = vrot.lane.b32.xlu1 %v548_v13, %s1129_s2  ;;  %566 = vrot.lane.b32.xlu0 %v547_v12, %s1129_s2 }
 0x63f   :  { %812 = vmatprep.subr.mxu0 %v743_v58  ;;  %v714_v58 = vld [vmem:[#allocation2 + $0x80] sm:$0xff] }
 0x640   :  { %813 = vmatpush1.msra.mxu0 %v742_v59  ;;  %v763_v59 = vunpack.c.h.bf16 %v714_v58  ;;  %v762_v60 = vunpack.c.l.bf16 %v714_v58 }
 0x641   :  { %814 = vmatprep.subr.mxu0 %v741_v61 }
 0x642   :  { %555 = vrot.lane.b32.xlu1 %v548_v13, %s1124_s28  ;;  %553 = vrot.lane.b32.xlu0 %v547_v12, %s1124_s28 }
 0x643   :  { %815 = vmatpush1.msra.mxu0 %v740_v63 }
 0x644   :  { %816 = vmatprep.subr.mxu0 %v739_v1 }
 0x645   :  { %817 = vmatpush1.msra.mxu0 %v738_v2 }
 0x646   :  { %818 = vmatprep.subr.mxu0 %v737_v4 }
 0x647   :  { %819 = vmatpush1.msra.mxu0 %v736_v5 }
 0x648   :  { %820 = vmatprep.subr.mxu0 %v735_v7 }
 0x649   :  { %821 = vmatpush1.msra.mxu0 %v734_v8 }
 0x64a   :  { %822 = vmatprep.subr.mxu0 %v733_v10 }
 0x64b   :  { %823 = vmatpush1.msra.mxu0 %v732_v11 }
 0x6ac   :  { %v578_v17 = vpop.permute.xlu1 %577  ;;  %v576_v18 = vpop.permute.xlu0 %575 }
 0x6ad   :  { %v583_v19 = vsel %vm581_vm2, %v578_v17, 0.0  ;;  %v582_v20 = vsel %vm581_vm2, %v576_v18, 0.0  ;;  %v727_v18 = vld [vmem:[#allocation2 + $0xe8] sm:$0xff] }
 0x6ae   :  { %1030 = vmatprep.subr.msk.mxu1 %vm1286_vm3, %v583_v19 }
 0x6af   :  { %1031 = vmatpush3.msk.msra.mxu1 %vm1286_vm3, %v583_v19  ;;  %v791_v19 = vunpack.c.h.bf16 %v728_v15 }
 0x6b0   :  { %v569_v21 = vpop.permute.xlu1 %568  ;;  %1032 = vmatprep.subr.msk.mxu1 %vm1286_vm3, %v582_v20  ;;  %v567_v62 = vpop.permute.xlu0 %566 }
 0x6b1   :  { %1033 = vmatpush3.msk.msra.mxu1 %vm1286_vm3, %v582_v20  ;;  %v790_v20 = vunpack.c.l.bf16 %v728_v15 }
 0x6b2   :  { %1034 = vmatprep.subr.msk.mxu1 %vm572_vm4, %v569_v21 }
 0x6b3   :  { %1035 = vmatpush3.msk.msra.mxu1 %vm572_vm4, %v569_v21  ;;  %v726_v21 = vld [vmem:[#allocation2 + $0xe0] sm:$0xff] }
 0x6b4   :  { %v556_v22 = vpop.permute.xlu1 %555  ;;  %1036 = vmatprep.subr.msk.mxu1 %vm572_vm4, %v567_v62  ;;  %v554_v23 = vpop.permute.xlu0 %553 }
 0x6b5   :  { %v561_v24 = vsel %vm559_vm5, %v556_v22, 0.0  ;;  %1037 = vmatpush3.msk.msra.mxu1 %vm572_vm4, %v567_v62  ;;  %v560_v25 = vsel %vm559_vm5, %v554_v23, 0.0  ;;  %v789_v62 = vunpack.c.h.bf16 %v727_v18  ;;  %v788_v22 = vunpack.c.l.bf16 %v727_v18  ;;  %v725_v23 = vld [vmem:[#allocation2 + $0xd8] sm:$0xff] }
 0x6b6   :  { %1038 = vmatprep.subr.msk.mxu1 %vm1286_vm3, %v561_v24 }
 0x6b7   :  { %1039 = vmatpush3.msk.msra.mxu1 %vm1286_vm3, %v561_v24  ;;  %v787_v24 = vunpack.c.h.bf16 %v726_v21 }
 0x6b8   :  { %1040 = vmatprep.subr.msk.mxu1 %vm1286_vm3, %v560_v25 }
 0x6b9   :  { %1041 = vmatpush3.msk.msra.mxu1 %vm1286_vm3, %v560_v25  ;;  %v786_v25 = vunpack.c.l.bf16 %v726_v21 }
 0x6ba   :  { %1042 = vmatprep.subr.mxu1 %v548_v13 }
 0x6bb   :  { %1043 = vmatpush3.msra.mxu1 %v548_v13  ;;  %v731_v13 = vunpack.c.h.bf16 %v698_v9 }
 0x6bc   :  { %1044 = vmatprep.subr.mxu1 %v547_v12 }
 0x6bd   :  { %1045 = vmatpush3.msra.mxu1 %v547_v12  ;;  %v729_v12 = vld [vmem:[#allocation2 + $0xf8] sm:$0xff]  ;;  %824 = vmatprep.subr.mxu0 %v731_v13 }
 0x6be   :  { %1047 = vmatmul.mubr.msk.f32.vlgmr.msra.gmra.mxu1 %vm590_vm1, %v587_v26  ;;  %v793_v16 = vunpack.c.h.bf16 %v729_v12  ;;  %v792_v17 = vunpack.c.l.bf16 %v729_v12  ;;  %825 = vmatpush1.msra.mxu0 %v730_v14  ;;  %v724_v26 = vld [vmem:[#allocation2 + $0xd0] sm:$0xff] }
 0x6bf   :  { %1049 = vmatprep.mubr.msk.f32.mxu1 %vm590_vm1, %v588_v27  ;;  %v785_v27 = vunpack.c.h.bf16 %v725_v23  ;;  %v783_v30 = vunpack.c.h.bf16 %v724_v26  ;;  %v782_v31 = vunpack.c.l.bf16 %v724_v26 }
 0x6c0   :  { %826 = vmatprep.subr.mxu0 %v793_v16 }
 0x6c1   :  { %827 = vmatpush2.msra.mxu0 %v792_v17 }
 0x6c2   :  { %1050 = vmatmul.mubr.msk.f32.gmra.mxu1 %vm590_vm1, %v589_v28  ;;  %828 = vmatprep.subr.mxu0 %v791_v19  ;;  %v784_v28 = vunpack.c.l.bf16 %v725_v23 }
 0x6c3   :  { %829 = vmatpush2.msra.mxu0 %v790_v20 }
 0x6c4   :  { %830 = vmatprep.subr.mxu0 %v789_v62 }
 0x6c5   :  { %831 = vmatpush2.msra.mxu0 %v788_v22 }
 0x6c6   :  { %832 = vmatprep.subr.mxu0 %v787_v24 }
 0x6c7   :  { %833 = vmatpush2.msra.mxu0 %v786_v25 }
 0x6c8   :  { %834 = vmatprep.subr.mxu0 %v785_v27 }
 0x6c9   :  { %835 = vmatpush2.msra.mxu0 %v784_v28 }
 0x6ca   :  { %836 = vmatprep.subr.mxu0 %v783_v30 }
 0x6cb   :  { %837 = vmatpush2.msra.mxu0 %v782_v31 }
 0x6cc   :  { %838 = vmatprep.subr.mxu0 %v781_v33 }
 0x6cd   :  { %839 = vmatpush2.msra.mxu0 %v780_v34 }
 0x6ce   :  { %840 = vmatprep.subr.mxu0 %v779_v36 }
 0x6cf   :  { %841 = vmatpush2.msra.mxu0 %v778_v37 }
 0x6d0   :  { %842 = vmatprep.subr.mxu0 %v777_v39 }
 0x6d1   :  { %843 = vmatpush2.msra.mxu0 %v776_v40 }
 0x6d2   :  { %844 = vmatprep.subr.mxu0 %v775_v42 }
 0x6d3   :  { %845 = vmatpush2.msra.mxu0 %v774_v43 }
 0x6d4   :  { %846 = vmatprep.subr.mxu0 %v773_v45 }
 0x6d5   :  { %847 = vmatpush2.msra.mxu0 %v772_v46 }
 0x6d6   :  { %848 = vmatprep.subr.mxu0 %v771_v48 }
 0x6d7   :  { %849 = vmatpush2.msra.mxu0 %v770_v49 }
 0x6d8   :  { %850 = vmatprep.subr.mxu0 %v769_v51 }
 0x6d9   :  { %851 = vmatpush2.msra.mxu0 %v768_v52 }
 0x6da   :  { %852 = vmatprep.subr.mxu0 %v767_v53 }
 0x6db   :  { %853 = vmatpush2.msra.mxu0 %v766_v55 }
 0x6dc   :  { %854 = vmatprep.subr.mxu0 %v765_v56 }
 0x6dd   :  { %855 = vmatpush2.msra.mxu0 %v764_v57 }
 0x6de   :  { %856 = vmatprep.subr.mxu0 %v763_v59 }
 0x6df   :  { %857 = vmatpush2.msra.mxu0 %v762_v60 }
 0x77e   :  { %v1048_v61 = vpop.f32.mrf.mxu1 }
 0x780   :  { %v669_v63 = vpop.f32.mrf.mxu1 }
 0x782   :  { %v1051_v0 = vpop.f32.mrf.mxu1 }
 0x783   :  { %v1073_v1 = vpack.i.bf16 %v1048_v61, %v1051_v0 }
 0x784   :  { %v679_v5 = vpop.f32.mrf.mxu1 }
 0x785   :  { %1074 = vrot.lane.b32.xlu1 %v1073_v1, %s1130_s5 }
 0x7f7   :  { %v1075_v2 = vpop.permute.xlu1 %1074 }
 0x7f8   :  { %v1077_v3 = vunpack.i.h.bf16 %v1075_v2  ;;  %v1076_v4 = vunpack.i.l.bf16 %v1075_v2 }
 0x7fa   :  { %v697_v6 = vsel %vm426_vm0, %v679_v5, %v1076_v4  ;;  %v696_v7 = vsel %vm426_vm0, %v669_v63, %v1077_v3 }
 0x7fb   :  { %858 = vmatprep.mubr.f32.mxu0 %v697_v6 }
 0x7fc   :  { %859 = vmatmul.mubr.f32.vlgmr.msra.gmra.mxu0 %v696_v7 }
 0x8bc   :  { %v860_v8 = vpop.f32.mrf.mxu0 }
 0x8bd   :  { %v911_v9 = vmul.f32 -1.442695, %v860_v8 }
 0x8be   :  { %v862_v10 = vpop.f32.mrf.mxu0 }
 0x8bf   :  { %1082 = vpow2.f32 %v911_v9  ;;  %v912_v11 = vmul.f32 -1.442695, %v862_v10 }
 0x8c1   :  { %1084 = vpow2.f32 %v912_v11 }
 0x8cc   :  { %v1083_v12 = vpop.eup %1082 }
 0x8cd   :  { %v871_v13 = vadd.f32 1.0, %v1083_v12 }
 0x8ce   :  { %v1085_v14 = vpop.eup %1084 }
 0x8cf   :  { %1086 = vrcp.f32 %v871_v13  ;;  %v872_v15 = vadd.f32 1.0, %v1085_v14 }
 0x8d1   :  { %1088 = vrcp.f32 %v872_v15 }
 0x8dc   :  { %v1087_v16 = vpop.eup %1086 }
 0x8dd   :  { %877 = vst [vmem:[%s1333_s7] sm:$0x3f] %v1087_v16 }
 0x8de   :  { %v1089_v17 = vpop.eup %1088 }
 0x8df   :  { %878 = vst [vmem:[%s1333_s7 + $0x8] sm:$0x3f] %v1089_v17 }
 0x8e0   :  { %883 = vsyncpa [#allocation3], 1 }

</bundles_post_ra>
